<compile_context>
chip_gen: v7x
topology: tpu7x:2x2x1
jax: 0.10.0
libtpu: 0.0.40
codegen_flags: <defaults>
</compile_context>

<pallas_src>
import functools

import jax
import jax.numpy as jnp
from jax.experimental import pallas as pl
from jax.experimental.pallas import tpu as pltpu

LN_EPS = 1e-5


def _round_up(x, m):
    return ((x + m - 1) // m) * m


def _patch_embed_kernel(x_ref, g1_ref, b1_ref, w_ref, bias_ref,
                        g2_ref, b2_ref, o_ref, *, inv_patch_d, inv_d_model):
    """LN(patch_d) -> Linear -> LN(d_model) on one block of rows.

    x_ref   : (rows, Kp)  f32   zero-padded patches (Kp = 128-padded patch_d)
    g1/b1   : (1, Kp)     f32   LN1 params, zero in padded lanes
    w       : (Kp, Dp)    bf16  Linear weight, zero-padded rows/cols
    bias    : (1, Dp)     f32   zero in padded lanes
    g2/b2   : (1, Dp)     f32   LN2 params, zero in padded lanes
    o_ref   : (rows, Dp)  f32   zero in padded lanes
    """
    x = x_ref[...]                                        # (rows, Kp) f32

    # LayerNorm over the real patch_d features.  Padded lanes are zero, so
    # plain sums over the padded axis are exact; var = E[x^2] - mu^2 lets the
    # two XLU reductions run back-to-back without re-reading (x - mu).
    sx = jnp.sum(x, axis=-1, keepdims=True)
    sxx = jnp.sum(x * x, axis=-1, keepdims=True)
    mu = sx * inv_patch_d
    var = sxx * inv_patch_d - mu * mu
    xn = (x - mu) * jax.lax.rsqrt(var + LN_EPS)
    xn = xn * g1_ref[0] + b1_ref[0]                       # padded lanes -> 0

    # Linear patch_d -> d_model on the MXU, bf16 operands / f32 accumulate.
    y = jnp.dot(xn.astype(jnp.bfloat16), w_ref[...],
                preferred_element_type=jnp.float32) + bias_ref[0]

    # LayerNorm over the real d_model features (padded lanes of y are 0).
    sy = jnp.sum(y, axis=-1, keepdims=True)
    syy = jnp.sum(y * y, axis=-1, keepdims=True)
    mu2 = sy * inv_d_model
    var2 = syy * inv_d_model - mu2 * mu2
    yn = (y - mu2) * jax.lax.rsqrt(var2 + LN_EPS)
    o_ref[...] = yn * g2_ref[0] + b2_ref[0]               # padded lanes -> 0


def vis_encoder_layer_forward(img, params, *, patch_size):
    """img: (B, C, H, W) float32 (NCHW).  Returns (B, N+1, d_model) float32."""
    B, C, H, W = img.shape
    ph = pw = patch_size
    nh, nw = H // ph, W // pw
    N = nh * nw
    patch_d = C * ph * pw
    d_model = params["w"].shape[1]

    # einops 'b c (h p1) (w p2) -> b (h w) (p1 p2 c)'  -- XLA glue.
    x = img.reshape(B, C, nh, ph, nw, pw)
    x = jnp.transpose(x, (0, 2, 4, 3, 5, 1))              # (B, nh, nw, p1, p2, C)
    x2d = x.reshape(B * N, patch_d)

    # Lane-dense padding of the feature axes, 8-aligned row tiling.
    Kp = _round_up(patch_d, 128)
    Dp = _round_up(d_model, 128)
    total_rows = B * N
    rows_per_tile = min(256, _round_up(total_rows, 8))
    padded_rows = _round_up(total_rows, rows_per_tile)
    num_tiles = padded_rows // rows_per_tile

    x2d = jnp.pad(x2d, ((0, padded_rows - total_rows), (0, Kp - patch_d)))
    g1 = jnp.pad(params["g1"], ((0, 0), (0, Kp - patch_d)))
    b1 = jnp.pad(params["b1"], ((0, 0), (0, Kp - patch_d)))
    w = jnp.pad(params["w"], ((0, Kp - patch_d), (0, Dp - d_model)))
    w = w.astype(jnp.bfloat16)
    bias = jnp.pad(params["bias"], ((0, 0), (0, Dp - d_model)))
    g2 = jnp.pad(params["g2"], ((0, 0), (0, Dp - d_model)))
    b2 = jnp.pad(params["b2"], ((0, 0), (0, Dp - d_model)))

    const2d = lambda shape: pl.BlockSpec(shape, lambda i: (0, 0))

    kernel = functools.partial(_patch_embed_kernel,
                               inv_patch_d=1.0 / patch_d,
                               inv_d_model=1.0 / d_model)

    out_pad = pl.pallas_call(
        kernel,
        out_shape=jax.ShapeDtypeStruct((padded_rows, Dp), jnp.float32),
        grid_spec=pltpu.PrefetchScalarGridSpec(
            num_scalar_prefetch=0,
            grid=(num_tiles,),
            in_specs=[
                pl.BlockSpec((rows_per_tile, Kp), lambda i: (i, 0)),  # patches
                const2d((1, Kp)),          # ln1 gamma
                const2d((1, Kp)),          # ln1 beta
                const2d((Kp, Dp)),         # W (bf16)
                const2d((1, Dp)),          # bias
                const2d((1, Dp)),          # ln2 gamma
                const2d((1, Dp)),          # ln2 beta
            ],
            out_specs=pl.BlockSpec((rows_per_tile, Dp), lambda i: (i, 0)),
        ),
        compiler_params=pltpu.CompilerParams(
            dimension_semantics=("parallel",)),
    )(x2d, g1, b1, w, bias, g2, b2)

    body = out_pad[:total_rows, :d_model].reshape(B, N, d_model)

    # cls prepend + positional embedding: trivial, done in XLA so the kernel
    # output stays (rows, 128)-aligned (avoids the 17-row misaligned concat).
    pos = params["pos"]                                    # (N+1, d_model)
    cls_row = (params["cls"] + pos[0:1])[None]             # (1, 1, d_model)
    cls_rows = jnp.broadcast_to(cls_row, (B, 1, d_model))
    tokens = jnp.concatenate([cls_rows, body + pos[1:][None]], axis=1)
    # Dropout(p=0.0) is the identity.
    return tokens


def _reference(img, params, *, patch_size):
    """Pure-JAX reference (same bf16 matmul cast as the kernel)."""
    B, C, H, W = img.shape
    ph = pw = patch_size
    nh, nw = H // ph, W // pw
    N = nh * nw
    x = img.reshape(B, C, nh, ph, nw, pw)
    x = jnp.transpose(x, (0, 2, 4, 3, 5, 1)).reshape(B, N, C * ph * pw)

    def ln(v, g, b):
        mu = jnp.mean(v, -1, keepdims=True)
        var = jnp.mean((v - mu) ** 2, -1, keepdims=True)
        return (v - mu) * jax.lax.rsqrt(var + LN_EPS) * g + b

    x = ln(x, params["g1"][0], params["b1"][0])
    x = jnp.dot(x.astype(jnp.bfloat16), params["w"].astype(jnp.bfloat16),
                preferred_element_type=jnp.float32) + params["bias"][0]
    x = ln(x, params["g2"][0], params["b2"][0])
    d = x.shape[-1]
    cls = jnp.broadcast_to(params["cls"][None], (B, 1, d))
    x = jnp.concatenate([cls, x], axis=1)
    return x + params["pos"][None]


if __name__ == "__main__":
    # Small config consistent with the module: image 16x16, patch 4, C=3 ->
    # N=16 patches, patch_d=48, d_model=32.
    B, C, H, W = 2, 3, 16, 16
    patch_size = 4
    d_model = 32
    N = (H // patch_size) * (W // patch_size)
    patch_d = C * patch_size * patch_size

    key = jax.random.PRNGKey(0)
    keys = jax.random.split(key, 10)
    img = jax.random.normal(keys[0], (B, C, H, W), jnp.float32)

    params = {
        # LayerNorm(patch_d)
        "g1": 1.0 + 0.01 * jax.random.normal(keys[1], (1, patch_d), jnp.float32),
        "b1": 0.01 * jax.random.normal(keys[2], (1, patch_d), jnp.float32),
        # Linear(patch_d, d_model) stored as (patch_d, d_model) for x @ W
        "w": 0.05 * jax.random.normal(keys[3], (patch_d, d_model), jnp.float32),
        "bias": 0.05 * jax.random.normal(keys[4], (1, d_model), jnp.float32),
        # LayerNorm(d_model)
        "g2": 1.0 + 0.01 * jax.random.normal(keys[5], (1, d_model), jnp.float32),
        "b2": 0.01 * jax.random.normal(keys[6], (1, d_model), jnp.float32),
        # cls token and positional embedding
        "cls": jax.random.normal(keys[7], (1, d_model), jnp.float32),
        "pos": jax.random.normal(keys[8], (N + 1, d_model), jnp.float32),
    }

    fwd = jax.jit(functools.partial(vis_encoder_layer_forward,
                                    patch_size=patch_size))
    out = fwd(img, params)
    out = jax.block_until_ready(out)

    ref = _reference(img, params, patch_size=patch_size)
    assert out.shape == (B, N + 1, d_model)
    assert jnp.allclose(out, ref, atol=1e-3, rtol=1e-3), \
        float(jnp.max(jnp.abs(out - ref)))

    print("KERNEL_OK")
</pallas_src>

<mosaic_0001>
module attributes {stable_mosaic.version = 11 : i64} {
  func.func @_patch_embed_kernel(%arg0: i32, %arg1: memref<32x128xf32, #tpu.memory_space<vmem>>, %arg2: memref<1x128xf32, #tpu.memory_space<vmem>>, %arg3: memref<1x128xf32, #tpu.memory_space<vmem>>, %arg4: memref<128x128xbf16, #tpu.memory_space<vmem>>, %arg5: memref<1x128xf32, #tpu.memory_space<vmem>>, %arg6: memref<1x128xf32, #tpu.memory_space<vmem>>, %arg7: memref<1x128xf32, #tpu.memory_space<vmem>>, %arg8: memref<32x128xf32, #tpu.memory_space<vmem>>) attributes {dimension_semantics = [#tpu.dimension_semantics<parallel>], iteration_bounds = array<i64: 1>, scalar_prefetch = 0 : i64, scratch_operands = 0 : i64, tpu.core_type = #tpu.core_type<tc>, window_params = [{transform_indices = @transform_0, window_bounds = array<i64: 32, 128>}, {pipeline_mode = #tpu.pipeline_mode<synchronous>, transform_indices = @transform_1, window_bounds = array<i64: 1, 128>}, {pipeline_mode = #tpu.pipeline_mode<synchronous>, transform_indices = @transform_2, window_bounds = array<i64: 1, 128>}, {pipeline_mode = #tpu.pipeline_mode<synchronous>, transform_indices = @transform_3, window_bounds = array<i64: 128, 128>}, {pipeline_mode = #tpu.pipeline_mode<synchronous>, transform_indices = @transform_4, window_bounds = array<i64: 1, 128>}, {pipeline_mode = #tpu.pipeline_mode<synchronous>, transform_indices = @transform_5, window_bounds = array<i64: 1, 128>}, {pipeline_mode = #tpu.pipeline_mode<synchronous>, transform_indices = @transform_6, window_bounds = array<i64: 1, 128>}, {transform_indices = @transform_7, window_bounds = array<i64: 32, 128>}]} {
    %c0 = arith.constant 0 : index
    %c0_0 = arith.constant 0 : index
    %0 = vector.load %arg1[%c0, %c0_0] : memref<32x128xf32, #tpu.memory_space<vmem>>, vector<32x128xf32>
    %cst = arith.constant dense<0.000000e+00> : vector<32xf32>
    %1 = vector.multi_reduction <add>, %0, %cst [1] : vector<32x128xf32> to vector<32xf32>
    %2 = vector.shape_cast %1 : vector<32xf32> to vector<32x1xf32>
    %3 = arith.mulf %0, %0 : vector<32x128xf32>
    %cst_1 = arith.constant dense<0.000000e+00> : vector<32xf32>
    %4 = vector.multi_reduction <add>, %3, %cst_1 [1] : vector<32x128xf32> to vector<32xf32>
    %5 = vector.shape_cast %4 : vector<32xf32> to vector<32x1xf32>
    %cst_2 = arith.constant 0.020833334 : f32
    %6 = vector.broadcast %cst_2 : f32 to vector<32x1xf32>
    %7 = arith.mulf %2, %6 : vector<32x1xf32>
    %cst_3 = arith.constant 0.020833334 : f32
    %8 = vector.broadcast %cst_3 : f32 to vector<32x1xf32>
    %9 = arith.mulf %5, %8 : vector<32x1xf32>
    %10 = arith.mulf %7, %7 : vector<32x1xf32>
    %11 = arith.subf %9, %10 : vector<32x1xf32>
    %12 = vector.broadcast %7 : vector<32x1xf32> to vector<32x128xf32>
    %13 = arith.subf %0, %12 : vector<32x128xf32>
    %cst_4 = arith.constant 9.99999974E-6 : f32
    %14 = vector.broadcast %cst_4 : f32 to vector<32x1xf32>
    %15 = arith.addf %11, %14 : vector<32x1xf32>
    %16 = math.rsqrt %15 : vector<32x1xf32>
    %17 = vector.broadcast %16 : vector<32x1xf32> to vector<32x128xf32>
    %18 = arith.mulf %13, %17 : vector<32x128xf32>
    %c0_5 = arith.constant 0 : index
    %c0_6 = arith.constant 0 : index
    %19 = vector.load %arg2[%c0_5, %c0_6] : memref<1x128xf32, #tpu.memory_space<vmem>>, vector<1x128xf32>
    %20 = vector.shape_cast %19 : vector<1x128xf32> to vector<128xf32>
    %21 = vector.shape_cast %20 : vector<128xf32> to vector<1x128xf32>
    %22 = vector.broadcast %21 : vector<1x128xf32> to vector<32x128xf32>
    %23 = arith.mulf %18, %22 : vector<32x128xf32>
    %c0_7 = arith.constant 0 : index
    %c0_8 = arith.constant 0 : index
    %24 = vector.load %arg3[%c0_7, %c0_8] : memref<1x128xf32, #tpu.memory_space<vmem>>, vector<1x128xf32>
    %25 = vector.shape_cast %24 : vector<1x128xf32> to vector<128xf32>
    %26 = vector.shape_cast %25 : vector<128xf32> to vector<1x128xf32>
    %27 = vector.broadcast %26 : vector<1x128xf32> to vector<32x128xf32>
    %28 = arith.addf %23, %27 : vector<32x128xf32>
    %29 = arith.truncf %28 : vector<32x128xf32> to vector<32x128xbf16>
    %c0_9 = arith.constant 0 : index
    %c0_10 = arith.constant 0 : index
    %30 = vector.load %arg4[%c0_9, %c0_10] : memref<128x128xbf16, #tpu.memory_space<vmem>>, vector<128x128xbf16>
    %cst_11 = arith.constant dense<0.000000e+00> : vector<32x128xf32>
    %31 = tpu.matmul %29, %30, %cst_11 {dimension_numbers = #tpu.dot_dimension_numbers<[1], [0], [0], [1], [0, 0, 1, 1], [], []>} : vector<32x128xbf16>, vector<128x128xbf16>, vector<32x128xf32> -> vector<32x128xf32>
    %c0_12 = arith.constant 0 : index
    %c0_13 = arith.constant 0 : index
    %32 = vector.load %arg5[%c0_12, %c0_13] : memref<1x128xf32, #tpu.memory_space<vmem>>, vector<1x128xf32>
    %33 = vector.shape_cast %32 : vector<1x128xf32> to vector<128xf32>
    %34 = vector.shape_cast %33 : vector<128xf32> to vector<1x128xf32>
    %35 = vector.broadcast %34 : vector<1x128xf32> to vector<32x128xf32>
    %36 = arith.addf %31, %35 : vector<32x128xf32>
    %cst_14 = arith.constant dense<0.000000e+00> : vector<32xf32>
    %37 = vector.multi_reduction <add>, %36, %cst_14 [1] : vector<32x128xf32> to vector<32xf32>
    %38 = vector.shape_cast %37 : vector<32xf32> to vector<32x1xf32>
    %39 = arith.mulf %36, %36 : vector<32x128xf32>
    %cst_15 = arith.constant dense<0.000000e+00> : vector<32xf32>
    %40 = vector.multi_reduction <add>, %39, %cst_15 [1] : vector<32x128xf32> to vector<32xf32>
    %41 = vector.shape_cast %40 : vector<32xf32> to vector<32x1xf32>
    %cst_16 = arith.constant 3.125000e-02 : f32
    %42 = vector.broadcast %cst_16 : f32 to vector<32x1xf32>
    %43 = arith.mulf %38, %42 : vector<32x1xf32>
    %cst_17 = arith.constant 3.125000e-02 : f32
    %44 = vector.broadcast %cst_17 : f32 to vector<32x1xf32>
    %45 = arith.mulf %41, %44 : vector<32x1xf32>
    %46 = arith.mulf %43, %43 : vector<32x1xf32>
    %47 = arith.subf %45, %46 : vector<32x1xf32>
    %48 = vector.broadcast %43 : vector<32x1xf32> to vector<32x128xf32>
    %49 = arith.subf %36, %48 : vector<32x128xf32>
    %cst_18 = arith.constant 9.99999974E-6 : f32
    %50 = vector.broadcast %cst_18 : f32 to vector<32x1xf32>
    %51 = arith.addf %47, %50 : vector<32x1xf32>
    %52 = math.rsqrt %51 : vector<32x1xf32>
    %53 = vector.broadcast %52 : vector<32x1xf32> to vector<32x128xf32>
    %54 = arith.mulf %49, %53 : vector<32x128xf32>
    %c0_19 = arith.constant 0 : index
    %c0_20 = arith.constant 0 : index
    %55 = vector.load %arg6[%c0_19, %c0_20] : memref<1x128xf32, #tpu.memory_space<vmem>>, vector<1x128xf32>
    %56 = vector.shape_cast %55 : vector<1x128xf32> to vector<128xf32>
    %57 = vector.shape_cast %56 : vector<128xf32> to vector<1x128xf32>
    %58 = vector.broadcast %57 : vector<1x128xf32> to vector<32x128xf32>
    %59 = arith.mulf %54, %58 : vector<32x128xf32>
    %c0_21 = arith.constant 0 : index
    %c0_22 = arith.constant 0 : index
    %60 = vector.load %arg7[%c0_21, %c0_22] : memref<1x128xf32, #tpu.memory_space<vmem>>, vector<1x128xf32>
    %61 = vector.shape_cast %60 : vector<1x128xf32> to vector<128xf32>
    %62 = vector.shape_cast %61 : vector<128xf32> to vector<1x128xf32>
    %63 = vector.broadcast %62 : vector<1x128xf32> to vector<32x128xf32>
    %64 = arith.addf %59, %63 : vector<32x128xf32>
    %c0_23 = arith.constant 0 : index
    %c0_24 = arith.constant 0 : index
    %65 = vector.load %arg8[%c0_23, %c0_24] : memref<32x128xf32, #tpu.memory_space<vmem>>, vector<32x128xf32>
    tpu.vector_store %arg8[%c0_23, %c0_24], %64 {strides = array<i32>} : memref<32x128xf32, #tpu.memory_space<vmem>>, vector<32x128xf32>,
    return
  }
  func.func @transform_0(%arg0: i32) -> (i32, i32) {
    %c0_i32 = arith.constant 0 : i32
    %c0_i32_0 = arith.constant 0 : i32
    return %arg0, %c0_i32 : i32, i32
  }
  func.func @transform_1(%arg0: i32) -> (i32, i32) {
    %c0_i32 = arith.constant 0 : i32
    %c0_i32_0 = arith.constant 0 : i32
    %c0_i32_1 = arith.constant 0 : i32
    return %c0_i32, %c0_i32_0 : i32, i32
  }
  func.func @transform_2(%arg0: i32) -> (i32, i32) {
    %c0_i32 = arith.constant 0 : i32
    %c0_i32_0 = arith.constant 0 : i32
    %c0_i32_1 = arith.constant 0 : i32
    return %c0_i32, %c0_i32_0 : i32, i32
  }
  func.func @transform_3(%arg0: i32) -> (i32, i32) {
    %c0_i32 = arith.constant 0 : i32
    %c0_i32_0 = arith.constant 0 : i32
    %c0_i32_1 = arith.constant 0 : i32
    return %c0_i32, %c0_i32_0 : i32, i32
  }
  func.func @transform_4(%arg0: i32) -> (i32, i32) {
    %c0_i32 = arith.constant 0 : i32
    %c0_i32_0 = arith.constant 0 : i32
    %c0_i32_1 = arith.constant 0 : i32
    return %c0_i32, %c0_i32_0 : i32, i32
  }
  func.func @transform_5(%arg0: i32) -> (i32, i32) {
    %c0_i32 = arith.constant 0 : i32
    %c0_i32_0 = arith.constant 0 : i32
    %c0_i32_1 = arith.constant 0 : i32
    return %c0_i32, %c0_i32_0 : i32, i32
  }
  func.func @transform_6(%arg0: i32) -> (i32, i32) {
    %c0_i32 = arith.constant 0 : i32
    %c0_i32_0 = arith.constant 0 : i32
    %c0_i32_1 = arith.constant 0 : i32
    return %c0_i32, %c0_i32_0 : i32, i32
  }
  func.func @transform_7(%arg0: i32) -> (i32, i32) {
    %c0_i32 = arith.constant 0 : i32
    %c0_i32_0 = arith.constant 0 : i32
    return %arg0, %c0_i32 : i32, i32
  }
}

</mosaic_0001>

<bundles_post_ra>
// kernel: vis_encoder_layer_forward.1
= control target key start
LH: loop header
LB: loop body
LE: loop exit
PB: predicated region body
PF: predicated region fallthrough
CT: control target
= control target key end

     0   :  { %s515_s0 = inlined_call_operand.vmem [shape: f32[32,128], index: 0, kind: input, shape index: {}]   ;;  %s516_s3 = inlined_call_operand.vmem [shape: bf16[128,128], index: 3, kind: input, shape index: {}]   ;;  %s517_s1 = inlined_call_operand.vmem [shape: f32[1,128], index: 1, kind: input, shape index: {}]   ;;  %s518_s2 = inlined_call_operand.vmem [shape: f32[1,128], index: 2, kind: input, shape index: {}]   ;;  %s519_s4 = inlined_call_operand.vmem [shape: f32[1,128], index: 4, kind: input, shape index: {}]   ;;  %s520_s5 = inlined_call_operand.vmem [shape: f32[1,128], index: 5, kind: input, shape index: {}]   ;;  %s521_s6 = inlined_call_operand.vmem [shape: f32[1,128], index: 6, kind: input, shape index: {}]   ;;  %s522_s7 = inlined_call_operand.vmem [shape: f32[32,128], index: 7, kind: output, shape index: {}]  }
   0x1   :  { %v419_v0 = vld [vmem:[%s515_s0 + $0x10] sm:$0xff]  ;;  %v424_v1 = vld [vmem:[%s515_s0] sm:$0xff]  ;;  %v431_v2 = vld [vmem:[%s515_s0 + $0x18] sm:$0xff] }
   0x2   :  { %35 = vadd.xlane.f32.xlu1 %v419_v0  ;;  %31 = vadd.xlane.f32.xlu0 %v424_v1  ;;  %v436_v3 = vld [vmem:[%s515_s0 + $0x8] sm:$0xff]  ;;  %v39_v5 = vmul.f32 %v424_v1, %v424_v1  ;;  %v42_v6 = vmul.f32 %v431_v2, %v431_v2  ;;  %v41_v7 = vmul.f32 %v419_v0, %v419_v0  ;;  %v352_v8 = vld [vmem:[%s516_s3] sm:$0xff]   ;;  %v354_v10 = vld [vmem:[%s516_s3 + $0x10] sm:$0xff]  }
   0x3   :  { %v40_v4 = vmul.f32 %v436_v3, %v436_v3  ;;  %332 = vmatprep.subr.bf16.mxu0 %v352_v8  ;;  %v353_v9 = vld [vmem:[%s516_s3 + $0x8] sm:$0xff]   ;;  %v355_v11 = vld [vmem:[%s516_s3 + $0x18] sm:$0xff]   ;;  %v356_v12 = vld [vmem:[%s516_s3 + $0x20] sm:$0xff]  }
   0x4   :  { %333 = vmatpush3.bf16.msra.mxu0 %v352_v8  ;;  %v357_v13 = vld [vmem:[%s516_s3 + $0x28] sm:$0xff]   ;;  %v358_v14 = vld [vmem:[%s516_s3 + $0x30] sm:$0xff]   ;;  %v359_v15 = vld [vmem:[%s516_s3 + $0x38] sm:$0xff]  }
   0x5   :  { %334 = vmatprep.subr.bf16.mxu0 %v353_v9  ;;  %v309_v47 = vld [vmem:[%s517_s1] ss:$0 sm:$0xff] }
   0x6   :  { %37 = vadd.xlane.f32.xlu1 %v431_v2  ;;  %33 = vadd.xlane.f32.xlu0 %v436_v3  ;;  %v310_v51 = vld [vmem:[%s518_s2] ss:$0 sm:$0xff] }
   0x8   :  { %335 = vmatpush3.bf16.msra.mxu0 %v353_v9 }
   0x9   :  { %336 = vmatprep.subr.bf16.mxu0 %v354_v10 }
   0xa   :  { %45 = vadd.xlane.f32.xlu1 %v40_v4  ;;  %43 = vadd.xlane.f32.xlu0 %v39_v5 }
   0xc   :  { %337 = vmatpush3.bf16.msra.mxu0 %v354_v10 }
   0xd   :  { %338 = vmatprep.subr.bf16.mxu0 %v355_v11 }
   0xe   :  { %49 = vadd.xlane.f32.xlu1 %v42_v6  ;;  %47 = vadd.xlane.f32.xlu0 %v41_v7 }
  0x10   :  { %339 = vmatpush3.bf16.msra.mxu0 %v355_v11 }
  0x11   :  { %340 = vmatprep.subr.bf16.mxu0 %v356_v12 }
  0x14   :  { %341 = vmatpush3.bf16.msra.mxu0 %v356_v12 }
  0x15   :  { %342 = vmatprep.subr.bf16.mxu0 %v357_v13 }
  0x18   :  { %343 = vmatpush3.bf16.msra.mxu0 %v357_v13 }
  0x19   :  { %344 = vmatprep.subr.bf16.mxu0 %v358_v14 }
  0x1c   :  { %345 = vmatpush3.bf16.msra.mxu0 %v358_v14 }
  0x1d   :  { %346 = vmatprep.subr.bf16.mxu0 %v359_v15 }
  0x20   :  { %347 = vmatpush3.bf16.msra.mxu0 %v359_v15 }
  0x8f   :  { %v36_v16 = vpop.xlane.xlu1 %35  ;;  %v32_v17 = vpop.xlane.xlu0 %31 }
  0x90   :  { %v51_v18 = vmul.f32 0.020833334, %v32_v17  ;;  %v53_v29 = vmul.f32 0.020833334, %v36_v16 }
  0x92   :  { %v59_v22 = vmul.f32 %v51_v18, %v51_v18  ;;  %v61_v38 = vmul.f32 %v53_v29, %v53_v29  ;;  %v67_v46 = vsub.f32 %v424_v1, %v51_v18  ;;  %v69_v55 = vsub.f32 %v419_v0, %v53_v29 }
  0x93   :  { %v38_v19 = vpop.xlane.xlu1 %37  ;;  %v34_v20 = vpop.xlane.xlu0 %33 }
  0x94   :  { %v52_v21 = vmul.f32 0.020833334, %v34_v20  ;;  %v54_v25 = vmul.f32 0.020833334, %v38_v19 }
  0x96   :  { %v60_v26 = vmul.f32 %v52_v21, %v52_v21  ;;  %v62_v34 = vmul.f32 %v54_v25, %v54_v25  ;;  %v68_v44 = vsub.f32 %v436_v3, %v52_v21  ;;  %v70_v52 = vsub.f32 %v431_v2, %v54_v25  ;;  %v311_v2 = vld [vmem:[%s519_s4] ss:$0 sm:$0xff] }
  0x97   :  { %v46_v23 = vpop.xlane.xlu1 %45  ;;  %v44_v24 = vpop.xlane.xlu0 %43 }
  0x98   :  { %v56_v27 = vmul.f32 0.020833334, %v46_v23  ;;  %v55_v28 = vmul.f32 0.020833334, %v44_v24 }
  0x9a   :  { %v64_v30 = vsub.f32 %v56_v27, %v60_v26  ;;  %v63_v31 = vsub.f32 %v55_v28, %v59_v22 }
  0x9b   :  { %v50_v32 = vpop.xlane.xlu1 %49  ;;  %v48_v33 = vpop.xlane.xlu0 %47 }
  0x9c   :  { %v72_v35 = vadd.f32 1e-05, %v64_v30  ;;  %v71_v36 = vadd.f32 1e-05, %v63_v31  ;;  %v58_v37 = vmul.f32 0.020833334, %v50_v32 }
  0x9d   :  { %v57_v39 = vmul.f32 0.020833334, %v48_v33 }
  0x9e   :  { %360 = vrsqrt.f32 %v72_v35  ;;  %v66_v40 = vsub.f32 %v58_v37, %v62_v34 }
  0x9f   :  { %362 = vrsqrt.f32 %v71_v36  ;;  %v65_v41 = vsub.f32 %v57_v39, %v61_v38 }
  0xa0   :  { %v74_v42 = vadd.f32 1e-05, %v66_v40 }
  0xa1   :  { %v73_v43 = vadd.f32 1e-05, %v65_v41 }
  0xa2   :  { %364 = vrsqrt.f32 %v74_v42 }
  0xa3   :  { %366 = vrsqrt.f32 %v73_v43 }
  0xa8   :  { %v361_v45 = vpop.eup %360 }
  0xa9   :  { %v363_v48 = vpop.eup %362  ;;  %v80_v49 = vmul.f32 %v361_v45, %v68_v44 }
  0xaa   :  { %v79_v50 = vmul.f32 %v363_v48, %v67_v46 }
  0xab   :  { %v91_v53 = vmul.f32 %v309_v47, %v80_v49 }
  0xac   :  { %v365_v54 = vpop.eup %364  ;;  %v90_v56 = vmul.f32 %v309_v47, %v79_v50 }
  0xad   :  { %v367_v57 = vpop.eup %366  ;;  %v102_v58 = vadd.f32 %v310_v51, %v91_v53  ;;  %v82_v59 = vmul.f32 %v365_v54, %v70_v52 }
  0xae   :  { %v101_v60 = vadd.f32 %v310_v51, %v90_v56  ;;  %v81_v61 = vmul.f32 %v367_v57, %v69_v55 }
  0xaf   :  { %v93_v62 = vmul.f32 %v309_v47, %v82_v59 }
  0xb0   :  { %v105_v63 = vpack.c.bf16 %v102_v58, %v101_v60  ;;  %v92_v1 = vmul.f32 %v309_v47, %v81_v61  ;;  %v320_v47 = vld [vmem:[%s520_s5] ss:$0 sm:$0xff] }
  0xb1   :  { %v104_v3 = vadd.f32 %v310_v51, %v93_v62 }
  0xb2   :  { %348 = vmatprep.mubr.bf16.mxu0 %v105_v63  ;;  %v103_v4 = vadd.f32 %v310_v51, %v92_v1  ;;  %v321_v51 = vld [vmem:[%s521_s6] ss:$0 sm:$0xff] }
  0xb4   :  { %v106_v5 = vpack.c.bf16 %v104_v3, %v103_v4 }
  0xb6   :  { %349 = vmatmul.mubr.bf16.vlgmr.msra.gmra.mrb[0].mxu0 %v106_v5 }
 0x189   :  { %v350_v6 = vpop.f32.mrb[0].mxu0 }
 0x18a   :  { %v485_v0 = vadd.f32 %v350_v6, %v311_v2  ;;  %v212_v7 = vpop.f32.mrb[1].mxu0 }
 0x18b   :  { %v351_v8 = vpop.f32.mrb[2].mxu0  ;;  %v213_v11 = vadd.f32 %v311_v2, %v212_v7 }
 0x18c   :  { %v487_v9 = vadd.f32 %v351_v8, %v311_v2  ;;  %231 = vadd.xlane.f32.xlu0 %v485_v0  ;;  %v215_v10 = vpop.f32.mrb[3].mxu0  ;;  %v237_v15 = vmul.f32 %v485_v0, %v485_v0 }
 0x18d   :  { %v216_v12 = vadd.f32 %v311_v2, %v215_v10  ;;  %v235_v13 = vmul.f32 %v213_v11, %v213_v11 }
 0x18e   :  { %233 = vadd.xlane.f32.xlu1 %v487_v9  ;;  %v238_v16 = vmul.f32 %v487_v9, %v487_v9 }
 0x18f   :  { %v236_v14 = vmul.f32 %v216_v12, %v216_v12 }
 0x190   :  { %227 = vadd.xlane.f32.xlu0 %v213_v11 }
 0x192   :  { %229 = vadd.xlane.f32.xlu1 %v216_v12 }
 0x194   :  { %239 = vadd.xlane.f32.xlu0 %v235_v13 }
 0x196   :  { %241 = vadd.xlane.f32.xlu1 %v236_v14 }
 0x198   :  { %243 = vadd.xlane.f32.xlu0 %v237_v15 }
 0x19a   :  { %245 = vadd.xlane.f32.xlu1 %v238_v16 }
 0x219   :  { %v232_v17 = vpop.xlane.xlu0 %231 }
 0x21a   :  { %v249_v24 = vmul.f32 0.03125, %v232_v17 }
 0x21b   :  { %v234_v18 = vpop.xlane.xlu1 %233 }
 0x21c   :  { %v250_v27 = vmul.f32 0.03125, %v234_v18  ;;  %v257_v33 = vmul.f32 %v249_v24, %v249_v24  ;;  %v265_v52 = vsub.f32 %v485_v0, %v249_v24 }
 0x21d   :  { %v228_v19 = vpop.xlane.xlu0 %227 }
 0x21e   :  { %v247_v20 = vmul.f32 0.03125, %v228_v19  ;;  %v258_v37 = vmul.f32 %v250_v27, %v250_v27  ;;  %v266_v56 = vsub.f32 %v487_v9, %v250_v27 }
 0x21f   :  { %v230_v21 = vpop.xlane.xlu1 %229 }
 0x220   :  { %v248_v22 = vmul.f32 0.03125, %v230_v21  ;;  %v255_v25 = vmul.f32 %v247_v20, %v247_v20  ;;  %v263_v45 = vsub.f32 %v213_v11, %v247_v20 }
 0x221   :  { %v240_v23 = vpop.xlane.xlu0 %239 }
 0x222   :  { %v251_v26 = vmul.f32 0.03125, %v240_v23  ;;  %v256_v29 = vmul.f32 %v248_v22, %v248_v22  ;;  %v264_v48 = vsub.f32 %v216_v12, %v248_v22 }
 0x223   :  { %v242_v28 = vpop.xlane.xlu1 %241 }
 0x224   :  { %v259_v30 = vsub.f32 %v251_v26, %v255_v25  ;;  %v252_v31 = vmul.f32 0.03125, %v242_v28 }
 0x225   :  { %v244_v32 = vpop.xlane.xlu0 %243 }
 0x226   :  { %v267_v34 = vadd.f32 1e-05, %v259_v30  ;;  %v260_v35 = vsub.f32 %v252_v31, %v256_v29  ;;  %v253_v36 = vmul.f32 0.03125, %v244_v32 }
 0x227   :  { %v246_v38 = vpop.xlane.xlu1 %245 }
 0x228   :  { %368 = vrsqrt.f32 %v267_v34  ;;  %v268_v39 = vadd.f32 1e-05, %v260_v35  ;;  %v261_v40 = vsub.f32 %v253_v36, %v257_v33  ;;  %v254_v41 = vmul.f32 0.03125, %v246_v38 }
 0x22a   :  { %370 = vrsqrt.f32 %v268_v39  ;;  %v269_v42 = vadd.f32 1e-05, %v261_v40  ;;  %v262_v43 = vsub.f32 %v254_v41, %v258_v37 }
 0x22c   :  { %372 = vrsqrt.f32 %v269_v42  ;;  %v270_v44 = vadd.f32 1e-05, %v262_v43 }
 0x22e   :  { %374 = vrsqrt.f32 %v270_v44 }
 0x232   :  { %v369_v46 = vpop.eup %368 }
 0x233   :  { %v275_v49 = vmul.f32 %v369_v46, %v263_v45 }
 0x234   :  { %v371_v50 = vpop.eup %370 }
 0x235   :  { %v286_v53 = vmul.f32 %v320_v47, %v275_v49  ;;  %v276_v54 = vmul.f32 %v371_v50, %v264_v48 }
 0x236   :  { %v373_v55 = vpop.eup %372 }
 0x237   :  { %v297_v57 = vadd.f32 %v321_v51, %v286_v53  ;;  %v287_v58 = vmul.f32 %v320_v47, %v276_v54  ;;  %v277_v59 = vmul.f32 %v373_v55, %v265_v52 }
 0x238   :  { %v375_v60 = vpop.eup %374 }
 0x239   :  { %301 = vst [vmem:[%s522_s7] sm:$0xff] %v297_v57  ;;  %v298_v61 = vadd.f32 %v321_v51, %v287_v58  ;;  %v288_v62 = vmul.f32 %v320_v47, %v277_v59  ;;  %v278_v63 = vmul.f32 %v375_v60, %v266_v56 }
 0x23b   :  { %302 = vst [vmem:[%s522_s7 + $0x8] sm:$0xff] %v298_v61  ;;  %v299_v1 = vadd.f32 %v321_v51, %v288_v62  ;;  %v289_v3 = vmul.f32 %v320_v47, %v278_v63 }
 0x23d   :  { %303 = vst [vmem:[%s522_s7 + $0x10] sm:$0xff] %v299_v1  ;;  %v300_v4 = vadd.f32 %v321_v51, %v289_v3 }
 0x23f   :  { %304 = vst [vmem:[%s522_s7 + $0x18] sm:$0xff] %v300_v4 }

</bundles_post_ra>
